<compile_context>
chip_gen: v5e
topology: v5e:2x2
jax: 0.10.0
libtpu: 0.0.40
codegen_flags: <defaults>
</compile_context>

<pallas_src>
import functools

import jax
import jax.numpy as jnp
from jax.experimental import pallas as pl
from jax.experimental.pallas import tpu as pltpu


BLOCK_ROWS_DEFAULT = 8192            # up to 8192x128 f32 = 4 MiB per buffer
VMEM_INPUT_BUDGET = 8 * 1024 * 1024  # all input pipeline buffers combined


def _hinge_sum_kernel(*refs, signs, total_rows, block_rows, partial_last):
    """Accumulates sum_k sum(relu(1 - signs[k] * x_k)) of one (block_rows, 128)
    tile per input into a resident (8, 128) f32 output accumulator."""
    x_refs, out_ref = refs[:-1], refs[-1]
    i = pl.program_id(0)

    @pl.when(i == 0)
    def _init():
        out_ref[...] = jnp.zeros_like(out_ref)

    # Hinge in f32 vregs; `sign` is a trace-time constant -> no vmul.
    vals = None
    for x_ref, sign in zip(x_refs, signs):
        x = x_ref[...].astype(jnp.float32)
        h = jnp.maximum(1.0 - x, 0.0) if sign > 0 else jnp.maximum(1.0 + x, 0.0)
        vals = h if vals is None else vals + h

    def _accum(v):
        # VPU-only partial reduction: fold row groups into the (8, 128) block.
        out_ref[...] += v.reshape(block_rows // 8, 8, 128).sum(axis=0)

    if partial_last:
        last = pl.num_programs(0) - 1

        @pl.when(i < last)
        def _interior():
            _accum(vals)

        @pl.when(i == last)
        def _boundary():
            # Only the boundary block pays for the mask; rows past the array
            # extent (undefined DMA contents, possibly NaN) are selected to 0.
            r = i * block_rows + jax.lax.broadcasted_iota(
                jnp.int32, (block_rows, 1), 0)
            _accum(jnp.where(r < total_rows, vals, 0.0))
    else:
        _accum(vals)


def _hinge_bulk_sums(xs, signs, block_rows=BLOCK_ROWS_DEFAULT):
    """Pallas partial reduction: sum_k sum(relu(1 - signs[k] * xs[k])) where all
    xs are identically-shaped (rows, 128) arrays of the same dtype."""
    rows = xs[0].shape[0]
    dtype = xs[0].dtype
    packing = max(1, 4 // dtype.itemsize)
    mult = 8 * packing                              # sublane tile in rows

    # Block rows: requested size, rounded to the sublane tile, capped by the
    # VMEM budget (n_inputs x 2 pipeline buffers) and by the array extent.
    cap_units = max(1, VMEM_INPUT_BUDGET // (len(xs) * 2 * 128 * dtype.itemsize
                                             * mult))
    units = max(1, min(pl.cdiv(int(block_rows), mult),
                       cap_units,
                       pl.cdiv(rows, mult)))
    br = units * mult
    n_blocks = pl.cdiv(rows, br)
    partial_last = (rows % br) != 0

    kernel = functools.partial(
        _hinge_sum_kernel,
        signs=tuple(float(s) for s in signs),
        total_rows=rows,
        block_rows=br,
        partial_last=partial_last,
    )

    partial_sums = pl.pallas_call(
        kernel,
        out_shape=jax.ShapeDtypeStruct((8, 128), jnp.float32),
        grid_spec=pltpu.PrefetchScalarGridSpec(
            num_scalar_prefetch=0,
            grid=(n_blocks,),
            in_specs=[pl.BlockSpec((br, 128), lambda i: (i, 0)) for _ in xs],
            out_specs=pl.BlockSpec((8, 128), lambda i: (0, 0)),
        ),
        compiler_params=pltpu.CompilerParams(
            dimension_semantics=("arbitrary",)),
    )(*xs)

    # Tiny one-shot cross-lane reduction (8*128 elements) in plain XLA.
    return jnp.sum(partial_sums)


def _split_bulk_tail(x):
    """Flatten x (free) and split into a lane-dense (rows, 128) bulk plus a
    <128-element tail (None if the size is already a multiple of 128)."""
    flat = x.reshape(-1)
    n = flat.size
    n_bulk = (n // 128) * 128
    if n_bulk == 0:
        return None, flat
    bulk = flat[:n_bulk].reshape(-1, 128)   # identity slice when aligned
    tail = None if n_bulk == n else flat[n_bulk:]
    return bulk, tail


def _hinge_tail_sum(tail, sign):
    if tail is None or tail.size == 0:
        return jnp.float32(0.0)
    t = tail.astype(jnp.float32)
    h = jnp.maximum(1.0 - t, 0.0) if sign > 0 else jnp.maximum(1.0 + t, 0.0)
    return jnp.sum(h)


def hinge_loss(pos, neg, weight=1.0, min_pallas_elems=1 << 15,
               block_rows=BLOCK_ROWS_DEFAULT):
    n_pos = pos.size
    n_neg = neg.size
    # Tiny or degenerate inputs: launch overhead dominates -> plain XLA.
    if (n_pos == 0 or n_neg == 0
            or (n_pos < min_pallas_elems and n_neg < min_pallas_elems)):
        return hinge_loss_ref(pos, neg, weight)

    pos_bulk, pos_tail = _split_bulk_tail(pos)
    neg_bulk, neg_tail = _split_bulk_tail(neg)

    s_pos_tail = _hinge_tail_sum(pos_tail, +1.0)
    s_neg_tail = _hinge_tail_sum(neg_tail, -1.0)

    fuse = (n_pos == n_neg
            and pos.dtype == neg.dtype
            and pos_bulk is not None and neg_bulk is not None)

    w = jnp.float32(weight)
    if fuse:
        # Same element count -> a single accumulator and a common 1/n works.
        s_bulk = _hinge_bulk_sums((pos_bulk, neg_bulk), (+1.0, -1.0),
                                  block_rows=block_rows)
        return w * 0.5 * (s_bulk + s_pos_tail + s_neg_tail) / n_pos

    s_pos = s_pos_tail
    if pos_bulk is not None:
        s_pos = s_pos + _hinge_bulk_sums((pos_bulk,), (+1.0,),
                                         block_rows=block_rows)
    s_neg = s_neg_tail
    if neg_bulk is not None:
        s_neg = s_neg + _hinge_bulk_sums((neg_bulk,), (-1.0,),
                                         block_rows=block_rows)
    return w * (0.5 * s_pos / n_pos + 0.5 * s_neg / n_neg)


def hinge_loss_ref(pos, neg, weight=1.0):
    pos = pos.astype(jnp.float32)
    neg = neg.astype(jnp.float32)
    return jnp.float32(weight) * (
        0.5 * jnp.mean(jnp.maximum(1.0 - pos, 0.0))
        + 0.5 * jnp.mean(jnp.maximum(1.0 + neg, 0.0))
    )


if __name__ == "__main__":
    key = jax.random.PRNGKey(0)
    k1, k2, k3, k4, k5, k6 = jax.random.split(key, 6)

    # Discriminator-style score maps: (batch=2, channels=4, 16, 16).
    pos = jax.random.normal(k1, (2, 4, 16, 16), dtype=jnp.float32)
    neg = jax.random.normal(k2, (2, 4, 16, 16), dtype=jnp.float32)

    # Force the Pallas path (min_pallas_elems=0): fused, fully aligned, no tail.
    out = jax.block_until_ready(hinge_loss(pos, neg, weight=1.0,
                                           min_pallas_elems=0))
    ref = jax.block_until_ready(hinge_loss_ref(pos, neg, weight=1.0))
    assert jnp.allclose(out, ref, rtol=1e-5, atol=1e-6), (out, ref)

    # Ragged shapes with a small block size: exercises multi-block tiling, the
    # masked partial boundary block and the sub-128-element XLA tail.
    pos2 = jax.random.normal(k3, (3, 4, 33, 29), dtype=jnp.float32)
    neg2 = jax.random.normal(k4, (3, 4, 29, 33), dtype=jnp.float32)
    out2 = jax.block_until_ready(hinge_loss(pos2, neg2, weight=0.7,
                                            min_pallas_elems=0, block_rows=40))
    ref2 = jax.block_until_ready(hinge_loss_ref(pos2, neg2, weight=0.7))
    assert jnp.allclose(out2, ref2, rtol=1e-5, atol=1e-6), (out2, ref2)

    # Mismatched element counts: takes the unfused (two-call) path.
    pos3 = jax.random.normal(k5, (2, 4, 32, 32), dtype=jnp.float32)
    neg3 = jax.random.normal(k6, (2, 4, 16, 16), dtype=jnp.float32)
    out3 = jax.block_until_ready(hinge_loss(pos3, neg3, weight=1.3,
                                            min_pallas_elems=0))
    ref3 = jax.block_until_ready(hinge_loss_ref(pos3, neg3, weight=1.3))
    assert jnp.allclose(out3, ref3, rtol=1e-5, atol=1e-6), (out3, ref3)

    # bf16 inputs: exercises the (16, 128) sublane tiling / packing path.
    pos4 = pos.astype(jnp.bfloat16)
    neg4 = neg.astype(jnp.bfloat16)
    out4 = jax.block_until_ready(hinge_loss(pos4, neg4, weight=1.0,
                                            min_pallas_elems=0))
    ref4 = jax.block_until_ready(hinge_loss_ref(pos4, neg4, weight=1.0))
    assert jnp.allclose(out4, ref4, rtol=1e-5, atol=1e-6), (out4, ref4)

    # Default dispatch: tiny inputs take the fused-XLA fallback path.
    out5 = jax.block_until_ready(hinge_loss(pos, neg, weight=1.0))
    assert jnp.allclose(out5, ref, rtol=1e-5, atol=1e-6), (out5, ref)

    print("KERNEL_OK")
</pallas_src>

<mosaic_0001>
module attributes {stable_mosaic.version = 11 : i64} {
  func.func @_hinge_sum_kernel(%arg0: i32, %arg1: memref<16x128xf32, #tpu.memory_space<vmem>>, %arg2: memref<16x128xf32, #tpu.memory_space<vmem>>, %arg3: memref<8x128xf32, #tpu.memory_space<vmem>>) attributes {dimension_semantics = [#tpu.dimension_semantics<arbitrary>], iteration_bounds = array<i64: 1>, scalar_prefetch = 0 : i64, scratch_operands = 0 : i64, tpu.core_type = #tpu.core_type<tc>, window_params = [{transform_indices = @transform_0, window_bounds = array<i64: 16, 128>}, {transform_indices = @transform_1, window_bounds = array<i64: 16, 128>}, {pipeline_mode = #tpu.pipeline_mode<synchronous>, transform_indices = @transform_2, window_bounds = array<i64: 8, 128>}]} {
    %c0_i32 = arith.constant 0 : i32
    %0 = arith.cmpi eq, %arg0, %c0_i32 : i32
    %1 = arith.extui %0 : i1 to i32
    %c0_i32_0 = arith.constant 0 : i32
    %2 = arith.cmpi ne, %1, %c0_i32_0 : i32
    scf.if %2 {
      %cst_12 = arith.constant 0.000000e+00 : f32
      %19 = vector.broadcast %cst_12 : f32 to vector<8x128xf32>
      %c0_13 = arith.constant 0 : index
      %c0_14 = arith.constant 0 : index
      %20 = vector.load %arg3[%c0_13, %c0_14] : memref<8x128xf32, #tpu.memory_space<vmem>>, vector<8x128xf32>
      tpu.vector_store %arg3[%c0_13, %c0_14], %19 {strides = array<i32>} : memref<8x128xf32, #tpu.memory_space<vmem>>, vector<8x128xf32>,
    } else {
    }
    %c0 = arith.constant 0 : index
    %c0_1 = arith.constant 0 : index
    %3 = vector.load %arg1[%c0, %c0_1] : memref<16x128xf32, #tpu.memory_space<vmem>>, vector<16x128xf32>
    %cst = arith.constant 1.000000e+00 : f32
    %4 = vector.broadcast %cst : f32 to vector<16x128xf32>
    %5 = arith.subf %4, %3 : vector<16x128xf32>
    %cst_2 = arith.constant 0.000000e+00 : f32
    %6 = vector.broadcast %cst_2 : f32 to vector<16x128xf32>
    %7 = arith.maximumf %5, %6 : vector<16x128xf32>
    %c0_3 = arith.constant 0 : index
    %c0_4 = arith.constant 0 : index
    %8 = vector.load %arg2[%c0_3, %c0_4] : memref<16x128xf32, #tpu.memory_space<vmem>>, vector<16x128xf32>
    %cst_5 = arith.constant 1.000000e+00 : f32
    %9 = vector.broadcast %cst_5 : f32 to vector<16x128xf32>
    %10 = arith.addf %9, %8 : vector<16x128xf32>
    %cst_6 = arith.constant 0.000000e+00 : f32
    %11 = vector.broadcast %cst_6 : f32 to vector<16x128xf32>
    %12 = arith.maximumf %10, %11 : vector<16x128xf32>
    %13 = arith.addf %7, %12 : vector<16x128xf32>
    %c0_7 = arith.constant 0 : index
    %c0_8 = arith.constant 0 : index
    %14 = vector.load %arg3[%c0_7, %c0_8] : memref<8x128xf32, #tpu.memory_space<vmem>>, vector<8x128xf32>
    %15 = vector.shape_cast %13 : vector<16x128xf32> to vector<2x8x128xf32>
    %cst_9 = arith.constant dense<0.000000e+00> : vector<8x128xf32>
    %16 = vector.multi_reduction <add>, %15, %cst_9 [0] : vector<2x8x128xf32> to vector<8x128xf32>
    %17 = arith.addf %14, %16 : vector<8x128xf32>
    %c0_10 = arith.constant 0 : index
    %c0_11 = arith.constant 0 : index
    %18 = vector.load %arg3[%c0_10, %c0_11] : memref<8x128xf32, #tpu.memory_space<vmem>>, vector<8x128xf32>
    tpu.vector_store %arg3[%c0_10, %c0_11], %17 {strides = array<i32>} : memref<8x128xf32, #tpu.memory_space<vmem>>, vector<8x128xf32>,
    return
  }
  func.func @transform_0(%arg0: i32) -> (i32, i32) {
    %c0_i32 = arith.constant 0 : i32
    %c0_i32_0 = arith.constant 0 : i32
    return %arg0, %c0_i32 : i32, i32
  }
  func.func @transform_1(%arg0: i32) -> (i32, i32) {
    %c0_i32 = arith.constant 0 : i32
    %c0_i32_0 = arith.constant 0 : i32
    return %arg0, %c0_i32 : i32, i32
  }
  func.func @transform_2(%arg0: i32) -> (i32, i32) {
    %c0_i32 = arith.constant 0 : i32
    %c0_i32_0 = arith.constant 0 : i32
    %c0_i32_1 = arith.constant 0 : i32
    return %c0_i32, %c0_i32_0 : i32, i32
  }
}

</mosaic_0001>

<bundles_post_ra>
// kernel: tpu_custom_call.1
= control target key start
LH: loop header
LB: loop body
LE: loop exit
PB: predicated region body
PF: predicated region fallthrough
CT: control target
= control target key end

     0   :  { %7 = vsyncpa [#allocation3], 0  ;;  %s198_s0 = inlined_call_operand.hbm [shape: f32[16,128], index: 0, kind: input, shape index: {}]   ;;  %s199_s1 = inlined_call_operand.hbm [shape: f32[16,128], index: 1, kind: input, shape index: {}]   ;;  %s200_s2 = inlined_call_operand.hbm [shape: f32[8,128], index: 2, kind: output, shape index: {}]  }
   0x1   :  { %8 = vsyncpa [#allocation6], 0 }
   0x2   :  { %9 = vsyncpa [#allocation4], 0  ;;  %s14_s11 = sshll.u32 %s198_s0, 4  ;;  %s169_s12 = smov [#allocation2]   ;;  %s15_s11 = int_to_ptr.hbm [resolvable:$true] %s14_s11 }
   0x3   :  { %s16_s13 = sshll.u32 %s169_s12, 4  ;;  %s27_s16 = sshll.u32 %s199_s1, 4  ;;  %s17_s13 = int_to_ptr.vmem [resolvable:$true] %s16_s13  ;;  %s28_s16 = int_to_ptr.hbm [resolvable:$true] %s27_s16 }
   0x4   :  { %s170_s17 = smov 128   ;;  %s171_s18 = smov 8  }
   0x5   :  { %22 = dma.hbm_to_vmem [thread:$0]  %s15_s11, 256, %s17_s13, [#allocation3], %s170_s17, %s170_s17, %s171_s18  }
   0x6   :  { %s172_s19 = smov [#allocation5]  }
   0x7   :  { %s29_s20 = sshll.u32 %s172_s19, 4  ;;  %s30_s20 = int_to_ptr.vmem [resolvable:$true] %s29_s20 }
   0x8   :  { %35 = dma.hbm_to_vmem [thread:$0]  %s28_s16, 256, %s30_s20, [#allocation6], %s170_s17, %s170_s17, %s171_s18  }
   0x9   :  { %163 = dma.done.wait [#allocation3], 256  }
   0xa   :  { %164 = vsyncadd [#allocation3], 4294967040 }
   0xb   :  { %165 = dma.done.wait [#allocation6], 256  }
   0xc   :  { %166 = vsyncadd [#allocation6], 4294967040  ;;  %v49_v0 = vld [vmem:[#allocation2] sm:$0xff]  ;;  %v50_v1 = vld [vmem:[#allocation2 + $0x8] sm:$0xff]  ;;  %s173_s0 = smov [#allocation7]   ;;  %s74_s23 = sshll.u32 %s200_s2, 4  ;;  %s75_s23 = int_to_ptr.hbm [resolvable:$true] %s74_s23 }
   0xd   :  { %v55_v2 = vld [vmem:[#allocation5] sm:$0xff]  ;;  %v51_v3 = vsub.f32 1.0, %v49_v0  ;;  %v52_v4 = vsub.f32 1.0, %v50_v1  ;;  %v56_v5 = vld [vmem:[#allocation5 + $0x8] sm:$0xff]  ;;  %s72_s1 = sshll.u32 %s173_s0, 4  ;;  %s73_s1 = int_to_ptr.vmem [resolvable:$true] %s72_s1 }
   0xe   :  { %v57_v6 = vadd.f32 1.0, %v55_v2  ;;  %v58_v7 = vadd.f32 1.0, %v56_v5 }
   0xf   :  { %v53_v8 = vmax.f32 %v51_v3, 0.0  ;;  %v54_v9 = vmax.f32 %v52_v4, 0.0 }
  0x10   :  { %v59_v10 = vmax.f32 %v57_v6, 0.0  ;;  %v60_v11 = vmax.f32 %v58_v7, 0.0 }
  0x12   :  { %v61_v12 = vadd.f32 %v59_v10, %v53_v8  ;;  %v62_v13 = vadd.f32 %v60_v11, %v54_v9 }
  0x14   :  { %v64_v14 = vadd.f32 %v62_v13, %v61_v12 }
  0x16   :  { %66 = vst [vmem:[#allocation7] sm:$0xff] %v64_v14 }
  0x17   :  { %77 = dma.vmem_to_hbm [thread:$0]  %s73_s1, 128, %s75_s23, [#allocation4]  }
  0x18   :  { %167 = dma.done.wait [#allocation4], 128  }
  0x19   :  { %168 = vsyncadd [#allocation4], 4294967168 }
  0x1a   :  { %82 = vsyncpa [#allocation3], 1 }
  0x1b   :  { %83 = vsyncpa [#allocation6], 1 }
  0x1c   :  { %84 = vsyncpa [#allocation4], 1 }

</bundles_post_ra>
